<compile_context>
chip_gen: v7x
topology: tpu7x:2x2x1
jax: 0.10.0
libtpu: 0.0.40
codegen_flags: <defaults>
</compile_context>

<pallas_src>
import jax
import jax.numpy as jnp
from jax import lax
from jax.experimental import pallas as pl
from jax.experimental.pallas import tpu as pltpu


def _round_up(x, m):
    return ((x + m - 1) // m) * m


def critic_kernel(obs_ref, tid_ref, w1o_ref, w1t_ref, b1_ref, w2_ref, b2_ref,
                  wl_ref, bl_ref, out_ref):
    obs = obs_ref[...]                       # (TB, obs_dim) f32
    tid = tid_ref[...]                       # (TB, 1) int32
    tb = obs.shape[0]
    n_tasks = w1t_ref.shape[0]

    # In-kernel one-hot of the task id (replaces XLA-side concat + one-hot HBM
    # materialization); one-hot @ w1_task is just a row select done on the MXU.
    onehot = (lax.broadcasted_iota(jnp.int32, (tb, n_tasks), 1) == tid)
    onehot = onehot.astype(jnp.float32)

    # base_net: Linear -> ReLU -> Linear -> ReLU (feature dims lane-padded).
    h1 = (jnp.dot(obs, w1o_ref[...], preferred_element_type=jnp.float32)
          + jnp.dot(onehot, w1t_ref[...], preferred_element_type=jnp.float32)
          + b1_ref[...])
    h1 = jnp.maximum(h1, 0.0)
    h2 = jnp.dot(h1, w2_ref[...], preferred_element_type=jnp.float32) + b2_ref[...]
    h2 = jnp.maximum(h2, 0.0)

    # Critic.last: Linear(output_dim, 1) as VPU multiply + XLU lane reduction
    # (avoids an N=1 MXU matmul).  bl is a scalar in SMEM.
    out_ref[...] = (jnp.sum(h2 * wl_ref[...], axis=-1, keepdims=True)
                    + bl_ref[0, 0])


def make_params(key, obs_dim, num_tasks, hidden, output_dim):
    """Logical (unpadded) parameters, matching the PyTorch module."""
    def linear_init(k, fan_in, fan_out):
        kw, kb = jax.random.split(k)
        bound = 1.0 / jnp.sqrt(jnp.float32(fan_in))
        w = jax.random.uniform(kw, (fan_in, fan_out), jnp.float32, -bound, bound)
        b = jax.random.uniform(kb, (1, fan_out), jnp.float32, -bound, bound)
        return w, b

    k1, k2, k3 = jax.random.split(key, 3)
    in_dim = obs_dim + num_tasks
    w1, b1 = linear_init(k1, in_dim, hidden)
    w2, b2 = linear_init(k2, hidden, output_dim)
    wl, bl = linear_init(k3, output_dim, 1)
    return (w1, b1, w2, b2, wl, bl)


def prepare_kernel_params(params, obs_dim, num_tasks):
    """Split w1 into obs/task parts and zero-pad feature dims to 128 multiples.

    Padding is exact: ReLU(0) = 0 and padded wl rows are 0, so padded channels
    never contribute to the logit.
    """
    w1, b1, w2, b2, wl, bl = params
    hidden = w1.shape[1]
    out_dim = w2.shape[1]
    hp = _round_up(hidden, 128)
    fp = _round_up(out_dim, 128)

    def pad_cols(a, n):
        return jnp.pad(a, ((0, 0), (0, n - a.shape[1])))

    w1_obs = pad_cols(w1[:obs_dim], hp)          # (obs_dim, Hp)
    w1_task = pad_cols(w1[obs_dim:], hp)         # (num_tasks, Hp)
    b1p = pad_cols(b1, hp)                       # (1, Hp)
    w2p = jnp.pad(w2, ((0, hp - hidden), (0, fp - out_dim)))   # (Hp, Fp)
    b2p = pad_cols(b2, fp)                       # (1, Fp)
    wl_row = pad_cols(wl.T, fp)                  # (1, Fp)
    blp = bl.reshape(1, 1)                       # (1, 1) -> SMEM scalar
    return (w1_obs, w1_task, b1p, w2p, b2p, wl_row, blp)


def critic_forward(obs, taskid, kparams, *, batch_tile=256):
    """obs: (B, obs_dim) f32, taskid: (B,) int -> logits (B, 1) f32."""
    B, obs_dim = obs.shape
    w1o, w1t, b1, w2, b2, wl, bl = kparams
    num_tasks = w1t.shape[0]
    hp = w1o.shape[1]
    fp = w2.shape[1]

    # Batch tiling: TB rows per grid step, batch padded up to a TB multiple.
    TB = min(batch_tile, _round_up(B, 8))
    Bp = _round_up(B, TB)
    if Bp != B:
        obs = jnp.pad(obs, ((0, Bp - B), (0, 0)))
        taskid = jnp.pad(taskid, (0, Bp - B))
    tid = taskid.astype(jnp.int32).reshape(Bp, 1)

    grid = (Bp // TB,)

    flops = 2 * Bp * (obs_dim * hp + num_tasks * hp + hp * fp + fp)
    bytes_accessed = 4 * (Bp * obs_dim + Bp            # activations in
                          + obs_dim * hp + num_tasks * hp + hp
                          + hp * fp + fp + fp + 1      # params
                          + Bp)                        # logits out

    out = pl.pallas_call(
        critic_kernel,
        out_shape=jax.ShapeDtypeStruct((Bp, 1), jnp.float32),
        grid_spec=pltpu.PrefetchScalarGridSpec(
            num_scalar_prefetch=0,
            grid=grid,
            in_specs=[
                pl.BlockSpec((TB, obs_dim), lambda i: (i, 0)),      # obs tile
                pl.BlockSpec((TB, 1), lambda i: (i, 0)),            # task ids
                pl.BlockSpec(w1o.shape, lambda i: (0, 0)),          # resident
                pl.BlockSpec(w1t.shape, lambda i: (0, 0)),
                pl.BlockSpec(b1.shape, lambda i: (0, 0)),
                pl.BlockSpec(w2.shape, lambda i: (0, 0)),
                pl.BlockSpec(b2.shape, lambda i: (0, 0)),
                pl.BlockSpec(wl.shape, lambda i: (0, 0)),
                pl.BlockSpec(memory_space=pltpu.MemorySpace.SMEM),  # bl scalar
            ],
            out_specs=pl.BlockSpec((TB, 1), lambda i: (i, 0)),
        ),
        compiler_params=pltpu.CompilerParams(
            dimension_semantics=("parallel",)),
        cost_estimate=pl.CostEstimate(
            flops=flops, transcendentals=0, bytes_accessed=bytes_accessed),
    )(obs, tid, w1o, w1t, b1, w2, b2, wl, bl)

    return out[:B]


def _reference(obs, taskid, params, num_tasks):
    w1, b1, w2, b2, wl, bl = params
    onehot = jax.nn.one_hot(taskid, num_tasks, dtype=jnp.float32)
    x = jnp.concatenate([obs, onehot], axis=-1)
    h1 = jnp.maximum(x @ w1 + b1, 0.0)
    h2 = jnp.maximum(h1 @ w2 + b2, 0.0)
    return h2 @ wl + bl


if __name__ == "__main__":
    key = jax.random.PRNGKey(0)
    k_obs, k_task, k_param = jax.random.split(key, 3)

    B, obs_dim, num_tasks, hidden, output_dim = 8, 24, 8, 32, 32

    obs = jax.random.normal(k_obs, (B, obs_dim), jnp.float32)
    taskid = jax.random.randint(k_task, (B,), 0, num_tasks)

    params = make_params(k_param, obs_dim, num_tasks, hidden, output_dim)
    kparams = prepare_kernel_params(params, obs_dim, num_tasks)

    logits = critic_forward(obs, taskid, kparams)
    logits = jax.block_until_ready(logits)

    ref = _reference(obs, taskid, params, num_tasks)
    assert logits.shape == (B, 1)
    assert jnp.allclose(logits, ref, atol=1e-4, rtol=1e-4), float(
        jnp.max(jnp.abs(logits - ref)))

    print("KERNEL_OK")
</pallas_src>

<mosaic_0001>
module attributes {stable_mosaic.version = 11 : i64} {
  func.func @critic_kernel(%arg0: i32, %arg1: memref<8x24xf32, #tpu.memory_space<vmem>>, %arg2: memref<8x1xi32, #tpu.memory_space<vmem>>, %arg3: memref<24x128xf32, #tpu.memory_space<vmem>>, %arg4: memref<8x128xf32, #tpu.memory_space<vmem>>, %arg5: memref<1x128xf32, #tpu.memory_space<vmem>>, %arg6: memref<128x128xf32, #tpu.memory_space<vmem>>, %arg7: memref<1x128xf32, #tpu.memory_space<vmem>>, %arg8: memref<1x128xf32, #tpu.memory_space<vmem>>, %arg9: memref<1x1xf32, #tpu.memory_space<smem>>, %arg10: memref<8x1xf32, #tpu.memory_space<vmem>>) attributes {dimension_semantics = [#tpu.dimension_semantics<parallel>], iteration_bounds = array<i64: 1>, scalar_prefetch = 0 : i64, scratch_operands = 0 : i64, tpu.core_type = #tpu.core_type<tc>, window_params = [{transform_indices = @transform_0, window_bounds = array<i64: 8, 24>}, {transform_indices = @transform_1, window_bounds = array<i64: 8, 1>}, {pipeline_mode = #tpu.pipeline_mode<synchronous>, transform_indices = @transform_2, window_bounds = array<i64: 24, 128>}, {pipeline_mode = #tpu.pipeline_mode<synchronous>, transform_indices = @transform_3, window_bounds = array<i64: 8, 128>}, {pipeline_mode = #tpu.pipeline_mode<synchronous>, transform_indices = @transform_4, window_bounds = array<i64: 1, 128>}, {pipeline_mode = #tpu.pipeline_mode<synchronous>, transform_indices = @transform_5, window_bounds = array<i64: 128, 128>}, {pipeline_mode = #tpu.pipeline_mode<synchronous>, transform_indices = @transform_6, window_bounds = array<i64: 1, 128>}, {pipeline_mode = #tpu.pipeline_mode<synchronous>, transform_indices = @transform_7, window_bounds = array<i64: 1, 128>}, {transform_indices = @transform_8, window_bounds = array<i64: 1, 1>}, {transform_indices = @transform_9, window_bounds = array<i64: 8, 1>}]} {
    %c0 = arith.constant 0 : index
    %c0_0 = arith.constant 0 : index
    %0 = vector.load %arg1[%c0, %c0_0] : memref<8x24xf32, #tpu.memory_space<vmem>>, vector<8x24xf32>
    %c0_1 = arith.constant 0 : index
    %c0_2 = arith.constant 0 : index
    %1 = vector.load %arg2[%c0_1, %c0_2] : memref<8x1xi32, #tpu.memory_space<vmem>>, vector<8x1xi32>
    %2 = tpu.iota {dimensions = array<i32: 1>} : vector<8x8xi32>
    %3 = vector.broadcast %1 : vector<8x1xi32> to vector<8x8xi32>
    %4 = arith.cmpi eq, %2, %3 : vector<8x8xi32>
    %5 = arith.extui %4 : vector<8x8xi1> to vector<8x8xi32>
    %6 = arith.sitofp %5 : vector<8x8xi32> to vector<8x8xf32>
    %c0_3 = arith.constant 0 : index
    %c0_4 = arith.constant 0 : index
    %7 = vector.load %arg3[%c0_3, %c0_4] : memref<24x128xf32, #tpu.memory_space<vmem>>, vector<24x128xf32>
    %cst = arith.constant dense<0.000000e+00> : vector<8x128xf32>
    %8 = tpu.matmul %0, %7, %cst {dimension_numbers = #tpu.dot_dimension_numbers<[1], [0], [0], [1], [0, 0, 1, 1], [], []>} : vector<8x24xf32>, vector<24x128xf32>, vector<8x128xf32> -> vector<8x128xf32>
    %c0_5 = arith.constant 0 : index
    %c0_6 = arith.constant 0 : index
    %9 = vector.load %arg4[%c0_5, %c0_6] : memref<8x128xf32, #tpu.memory_space<vmem>>, vector<8x128xf32>
    %cst_7 = arith.constant dense<0.000000e+00> : vector<8x128xf32>
    %10 = tpu.matmul %6, %9, %cst_7 {dimension_numbers = #tpu.dot_dimension_numbers<[1], [0], [0], [1], [0, 0, 1, 1], [], []>} : vector<8x8xf32>, vector<8x128xf32>, vector<8x128xf32> -> vector<8x128xf32>
    %11 = arith.addf %8, %10 : vector<8x128xf32>
    %c0_8 = arith.constant 0 : index
    %c0_9 = arith.constant 0 : index
    %12 = vector.load %arg5[%c0_8, %c0_9] : memref<1x128xf32, #tpu.memory_space<vmem>>, vector<1x128xf32>
    %13 = vector.broadcast %12 : vector<1x128xf32> to vector<8x128xf32>
    %14 = arith.addf %11, %13 : vector<8x128xf32>
    %cst_10 = arith.constant 0.000000e+00 : f32
    %15 = vector.broadcast %cst_10 : f32 to vector<8x128xf32>
    %16 = arith.maximumf %14, %15 : vector<8x128xf32>
    %c0_11 = arith.constant 0 : index
    %c0_12 = arith.constant 0 : index
    %17 = vector.load %arg6[%c0_11, %c0_12] : memref<128x128xf32, #tpu.memory_space<vmem>>, vector<128x128xf32>
    %cst_13 = arith.constant dense<0.000000e+00> : vector<8x128xf32>
    %18 = tpu.matmul %16, %17, %cst_13 {dimension_numbers = #tpu.dot_dimension_numbers<[1], [0], [0], [1], [0, 0, 1, 1], [], []>} : vector<8x128xf32>, vector<128x128xf32>, vector<8x128xf32> -> vector<8x128xf32>
    %c0_14 = arith.constant 0 : index
    %c0_15 = arith.constant 0 : index
    %19 = vector.load %arg7[%c0_14, %c0_15] : memref<1x128xf32, #tpu.memory_space<vmem>>, vector<1x128xf32>
    %20 = vector.broadcast %19 : vector<1x128xf32> to vector<8x128xf32>
    %21 = arith.addf %18, %20 : vector<8x128xf32>
    %cst_16 = arith.constant 0.000000e+00 : f32
    %22 = vector.broadcast %cst_16 : f32 to vector<8x128xf32>
    %23 = arith.maximumf %21, %22 : vector<8x128xf32>
    %c0_17 = arith.constant 0 : index
    %c0_18 = arith.constant 0 : index
    %24 = vector.load %arg8[%c0_17, %c0_18] : memref<1x128xf32, #tpu.memory_space<vmem>>, vector<1x128xf32>
    %25 = vector.broadcast %24 : vector<1x128xf32> to vector<8x128xf32>
    %26 = arith.mulf %23, %25 : vector<8x128xf32>
    %cst_19 = arith.constant dense<0.000000e+00> : vector<8xf32>
    %27 = vector.multi_reduction <add>, %26, %cst_19 [1] : vector<8x128xf32> to vector<8xf32>
    %28 = vector.shape_cast %27 : vector<8xf32> to vector<8x1xf32>
    %c0_20 = arith.constant 0 : index
    %c0_21 = arith.constant 0 : index
    %29 = memref.load %arg9[%c0_20, %c0_21] : memref<1x1xf32, #tpu.memory_space<smem>>
    %30 = vector.broadcast %29 : f32 to vector<8x1xf32>
    %31 = arith.addf %28, %30 : vector<8x1xf32>
    %c0_22 = arith.constant 0 : index
    %c0_23 = arith.constant 0 : index
    %32 = vector.load %arg10[%c0_22, %c0_23] : memref<8x1xf32, #tpu.memory_space<vmem>>, vector<8x1xf32>
    tpu.vector_store %arg10[%c0_22, %c0_23], %31 {strides = array<i32>} : memref<8x1xf32, #tpu.memory_space<vmem>>, vector<8x1xf32>,
    return
  }
  func.func @transform_0(%arg0: i32) -> (i32, i32) {
    %c0_i32 = arith.constant 0 : i32
    %c0_i32_0 = arith.constant 0 : i32
    return %arg0, %c0_i32 : i32, i32
  }
  func.func @transform_1(%arg0: i32) -> (i32, i32) {
    %c0_i32 = arith.constant 0 : i32
    %c0_i32_0 = arith.constant 0 : i32
    return %arg0, %c0_i32 : i32, i32
  }
  func.func @transform_2(%arg0: i32) -> (i32, i32) {
    %c0_i32 = arith.constant 0 : i32
    %c0_i32_0 = arith.constant 0 : i32
    %c0_i32_1 = arith.constant 0 : i32
    return %c0_i32, %c0_i32_0 : i32, i32
  }
  func.func @transform_3(%arg0: i32) -> (i32, i32) {
    %c0_i32 = arith.constant 0 : i32
    %c0_i32_0 = arith.constant 0 : i32
    %c0_i32_1 = arith.constant 0 : i32
    return %c0_i32, %c0_i32_0 : i32, i32
  }
  func.func @transform_4(%arg0: i32) -> (i32, i32) {
    %c0_i32 = arith.constant 0 : i32
    %c0_i32_0 = arith.constant 0 : i32
    %c0_i32_1 = arith.constant 0 : i32
    return %c0_i32, %c0_i32_0 : i32, i32
  }
  func.func @transform_5(%arg0: i32) -> (i32, i32) {
    %c0_i32 = arith.constant 0 : i32
    %c0_i32_0 = arith.constant 0 : i32
    %c0_i32_1 = arith.constant 0 : i32
    return %c0_i32, %c0_i32_0 : i32, i32
  }
  func.func @transform_6(%arg0: i32) -> (i32, i32) {
    %c0_i32 = arith.constant 0 : i32
    %c0_i32_0 = arith.constant 0 : i32
    %c0_i32_1 = arith.constant 0 : i32
    return %c0_i32, %c0_i32_0 : i32, i32
  }
  func.func @transform_7(%arg0: i32) -> (i32, i32) {
    %c0_i32 = arith.constant 0 : i32
    %c0_i32_0 = arith.constant 0 : i32
    %c0_i32_1 = arith.constant 0 : i32
    return %c0_i32, %c0_i32_0 : i32, i32
  }
  func.func @transform_8(%arg0: i32) -> (i32, i32) {
    %c0_i32 = arith.constant 0 : i32
    %c0_i32_0 = arith.constant 0 : i32
    %c0_i32_1 = arith.constant 0 : i32
    return %c0_i32, %c0_i32_0 : i32, i32
  }
  func.func @transform_9(%arg0: i32) -> (i32, i32) {
    %c0_i32 = arith.constant 0 : i32
    %c0_i32_0 = arith.constant 0 : i32
    return %arg0, %c0_i32 : i32, i32
  }
}

</mosaic_0001>

<bundles_post_ra>
// kernel: tpu_custom_call.1
= control target key start
LH: loop header
LB: loop body
LE: loop exit
PB: predicated region body
PF: predicated region fallthrough
CT: control target
= control target key end

     0   :  { %15 = vsyncpa [#allocation4], 0  ;;  %s618_s0 = inlined_call_operand.vmem [shape: f32[8,24], index: 0, kind: input, shape index: {}]   ;;  %s619_s1 = inlined_call_operand.vmem [shape: s32[8,1], index: 1, kind: input, shape index: {}]   ;;  %s620_s2 = inlined_call_operand.hbm [shape: f32[24,128], index: 2, kind: input, shape index: {}]   ;;  %s621_s3 = inlined_call_operand.vmem [shape: f32[8,128], index: 3, kind: input, shape index: {}]   ;;  %s622_s4 = inlined_call_operand.vmem [shape: f32[1,128], index: 4, kind: input, shape index: {}]   ;;  %s623_s5 = inlined_call_operand.hbm [shape: f32[128,128], index: 5, kind: input, shape index: {}]   ;;  %s624_s6 = inlined_call_operand.vmem [shape: f32[1,128], index: 6, kind: input, shape index: {}]   ;;  %s625_s7 = inlined_call_operand.vmem [shape: f32[1,128], index: 7, kind: input, shape index: {}]   ;;  %s626_s8 = inlined_call_operand.<no memory space> [shape: f32[1,1], index: 8, kind: input, shape index: {}]   ;;  %s627_s9 = inlined_call_operand.vmem [shape: f32[8,1], index: 9, kind: output, shape index: {}]  }
   0x1   :  { %16 = vsyncpa [#allocation6], 0  ;;  %s509_s30 = smov [#allocation3]   ;;  %s461_s13 = scalar_lea.hbm %s620_s2, 384 }
   0x2   :  { %s26_s10 = sshll.u32 %s509_s30, 4  ;;  %p462_p0 = scmp.ne.s32.totalorder %s620_s2, %s461_s13  ;;  %s27_s10 = int_to_ptr.vmem [resolvable:$true] %s26_s10 }
   0x3   :  { %p465_p1 = scmp.lt.u32.totalorder %s461_s13, %s620_s2 }
   0x5   :  { %p467_p2 = pnand %p465_p1, %p462_p0 }
   0x7   :  { %470 = shalt.err (!%p467_p2)
}
   0x8   :  { %s471_s18 = scalar_lea.vmem %s27_s10, 384  ;;  %p476_p4 = scmp.lt.s32.totalorder %s27_s10, %s27_s10 }
   0x9   :  { %p472_p3 = scmp.ne.s32.totalorder %s27_s10, %s471_s18  ;;  %p477_p5 = scmp.lt.s32.totalorder %s471_s18, %s471_s18 }
   0xb   :  { %p478_p6 = por %p477_p5, %p476_p4 }
   0xd   :  { %p479_p7 = pnand %p478_p6, %p472_p3 }
   0xf   :  { %482 = shalt.err (!%p479_p7)
}
  0x10   :  { %s510_s19 = smov 128   ;;  %s511_s20 = smov 8  }
  0x11   :  { %32 = dma.hbm_to_vmem [thread:$0]  %s620_s2, 384, %s27_s10, [#allocation4], %s510_s19, %s510_s19, %s511_s20  }
  0x12   :  { %s512_s23 = smov [#allocation5]   ;;  %s483_s27 = scalar_lea.hbm %s623_s5, 2048 }
  0x13   :  { %s42_s24 = sshll.u32 %s512_s23, 4  ;;  %p484_p8 = scmp.ne.s32.totalorder %s623_s5, %s483_s27  ;;  %s43_s24 = int_to_ptr.vmem [resolvable:$true] %s42_s24 }
  0x14   :  { %p487_p9 = scmp.lt.u32.totalorder %s483_s27, %s623_s5 }
  0x16   :  { %p489_p10 = pnand %p487_p9, %p484_p8 }
  0x18   :  { %492 = shalt.err (!%p489_p10)
}
  0x19   :  { %s493_s12 = scalar_lea.vmem %s43_s24, 2048  ;;  %p498_p12 = scmp.lt.s32.totalorder %s43_s24, %s43_s24 }
  0x1a   :  { %p494_p11 = scmp.ne.s32.totalorder %s43_s24, %s493_s12  ;;  %p499_p13 = scmp.lt.s32.totalorder %s493_s12, %s493_s12 }
  0x1c   :  { %p500_p0 = por %p499_p13, %p498_p12 }
  0x1e   :  { %p501_p1 = pnand %p500_p0, %p494_p11 }
  0x20   :  { %504 = shalt.err (!%p501_p1)
}
  0x21   :  { %48 = dma.hbm_to_vmem [thread:$0]  %s623_s5, 2048, %s43_s24, [#allocation6], %s510_s19, %s510_s19, %s511_s20  }
  0x22   :  { %505 = dma.done.wait [#allocation4], 384  }
  0x23   :  { %506 = vsyncadd [#allocation4], 4294966912 }
  0x24   :  { %507 = dma.done.wait [#allocation6], 2048  }
  0x25   :  { %508 = vsyncadd [#allocation6], 4294965248  ;;  %v513_v0 = vmov 0   ;;  %v514_v1 = vmov 0.0   ;;  %v62_v2 = vld [vmem:[%s619_s1] sm:$0xff]  ;;  %vm515_vm0 = vmmov 0   ;;  %v63_v20 = vlaneseq }
  0x26   :  { %460 = vset.pattern.permute.xlu0 %v513_v0  ;;  %376 = vmatprep.subr.mxu1 %v514_v1  ;;  %v74_v3 = vld [vmem:[%s621_s3] sm:$0xff]  ;;  %v516_v4 = vmov 0.0|0.0   ;;  %v232_v5 = vld [vmem:[#allocation5] sm:$0xff]  ;;  %v234_v7 = vld [vmem:[#allocation5 + $0x10] sm:$0xff]  ;;  %vm75_vm1 = vcmask 64512   ;;  %vm149_vm3 = vcmask 195584   ;;  %v337_v53 = vstv %s626_s8 }
  0x27   :  { %66 = vperm.xlu0 %460, %v62_v2   ;;  %377 = vmatpush3.msra.mxu1 %v74_v3  ;;  %v233_v6 = vld [vmem:[#allocation5 + $0x8] sm:$0xff]  ;;  %v235_v9 = vld [vmem:[#allocation5 + $0x18] sm:$0xff]  ;;  %v236_v11 = vld [vmem:[#allocation5 + $0x20] sm:$0xff]  ;;  %v64_v21 = vand.u32 127, %v63_v20  ;;  %vm339_vm4 = vcmask 7168  }
  0x28   :  { %378 = vmatprep.mubr.msk.f32.mxu1 %vm515_vm0, %v514_v1  ;;  %425 = vmatprep.subr.bf16.mxu1 %v516_v4  ;;  %v429_v8 = vpack.c.bf16 %v233_v6, %v232_v5  ;;  %v432_v10 = vpack.c.bf16 %v235_v9, %v234_v7  ;;  %v237_v12 = vld [vmem:[#allocation5 + $0x28] sm:$0xff]  ;;  %v238_v14 = vld [vmem:[#allocation5 + $0x30] sm:$0xff]  ;;  %v239_v15 = vld [vmem:[#allocation5 + $0x38] sm:$0xff] }
  0x29   :  { %428 = vmatprep.subr.bf16.mxu0 %v516_v4  ;;  %422 = vmatprep.mubr.msk.f32.mxu0 %vm515_vm0, %v514_v1  ;;  %v435_v13 = vpack.c.bf16 %v237_v12, %v236_v11  ;;  %v438_v16 = vpack.c.bf16 %v239_v15, %v238_v14  ;;  %v240_v17 = vld [vmem:[#allocation5 + $0x40] sm:$0xff]  ;;  %v241_v18 = vld [vmem:[#allocation5 + $0x48] sm:$0xff]  ;;  %v72_v23 = vld [vmem:[#allocation3 + $0x8] sm:$0xff] }
  0x2a   :  { %430 = vmatpush3.bf16.msra.mxu0 %v429_v8  ;;  %v441_v19 = vpack.c.bf16 %v241_v18, %v240_v17  ;;  %v71_v22 = vld [vmem:[#allocation3] sm:$0xff]  ;;  %v73_v27 = vld [vmem:[#allocation3 + $0x10] sm:$0xff]  ;;  %v242_v29 = vld [vmem:[#allocation5 + $0x50] sm:$0xff] }
  0x2b   :  { %431 = vmatprep.subr.bf16.mxu0 %v516_v4  ;;  %v426_v25 = vpack.c.bf16 %v72_v23, %v71_v22  ;;  %v61_v28 = vld [vmem:[%s618_s0] sm:$0xff]  ;;  %v243_v30 = vld [vmem:[#allocation5 + $0x58] sm:$0xff]  ;;  %v244_v32 = vld [vmem:[#allocation5 + $0x60] sm:$0xff] }
  0x2c   :  { %v444_v31 = vpack.c.bf16 %v243_v30, %v242_v29  ;;  %v245_v33 = vld [vmem:[#allocation5 + $0x68] sm:$0xff]  ;;  %v246_v35 = vld [vmem:[#allocation5 + $0x70] sm:$0xff]  ;;  %v247_v36 = vld [vmem:[#allocation5 + $0x78] sm:$0xff] }
  0x2d   :  { %v447_v34 = vpack.c.bf16 %v245_v33, %v244_v32  ;;  %v450_v37 = vpack.c.bf16 %v247_v36, %v246_v35  ;;  %v350_v41 = vld [vmem:[%s622_s4] ss:$0 sm:$0xff] }
  0x2e   :  { %433 = vmatpush3.bf16.msra.mxu0 %v432_v10  ;;  %v351_v46 = vld [vmem:[%s624_s6] ss:$0 sm:$0xff] }
  0x2f   :  { %434 = vmatprep.subr.bf16.mxu0 %v516_v4  ;;  %v352_v50 = vld [vmem:[%s625_s7] ss:$0 sm:$0xff] }
  0x32   :  { %436 = vmatpush3.bf16.msra.mxu0 %v435_v13 }
  0x33   :  { %437 = vmatprep.subr.bf16.mxu0 %v516_v4 }
  0x36   :  { %439 = vmatpush3.bf16.msra.mxu0 %v438_v16 }
  0x37   :  { %440 = vmatprep.subr.bf16.mxu0 %v516_v4 }
  0x3a   :  { %442 = vmatpush3.bf16.msra.mxu0 %v441_v19 }
  0x3b   :  { %443 = vmatprep.subr.bf16.mxu0 %v516_v4 }
  0x3e   :  { %445 = vmatpush3.bf16.msra.mxu0 %v444_v31 }
  0x3f   :  { %446 = vmatprep.subr.bf16.mxu0 %v516_v4 }
  0x42   :  { %448 = vmatpush3.bf16.msra.mxu0 %v447_v34 }
  0x43   :  { %449 = vmatprep.subr.bf16.mxu0 %v516_v4 }
  0x46   :  { %451 = vmatpush3.bf16.msra.mxu0 %v450_v37 }
  0xa6   :  { %v67_v24 = vpop.permute.xlu0 %66 }
  0xa7   :  { %vm68_vm2 = vcmp.eq.s32.totalorder %v64_v21, %v67_v24 }
  0xa8   :  { %v347_v26 = vsel %vm68_vm2, 1.0, %v514_v1 }
  0xa9   :  { %379 = vmatmul.mubr.msk.f32.vlgmr.msra.gmra.mrb[0].mxu1 %vm75_vm1, %v347_v26 }
  0xaa   :  { %427 = vmatpush3.bf16.msra.mxu1 %v426_v25  ;;  %387 = vmatprep.mubr.msk.f32.mxu1 %vm515_vm0, %v514_v1 }
  0xab   :  { %385 = vmatprep.subr.mxu1 %v514_v1 }
  0xae   :  { %386 = vmatpush3.msra.mxu1 %v73_v27 }
  0xaf   :  { %388 = vmatmul.mubr.msk.f32.vlgmr.msra.gmra.mrb[2].mxu1 %vm149_vm3, %v61_v28 }
 0x17c   :  { %v145_v38 = vpop.f32.mrb[0].mxu1 }
 0x17d   :  { %v380_v39 = vpop.f32.mrb[1].mxu1 }
 0x182   :  { %v219_v40 = vpop.f32.mrb[2].mxu1 }
 0x183   :  { %v220_v42 = vadd.f32 %v219_v40, %v145_v38  ;;  %v389_v43 = vpop.f32.mrb[3].mxu1 }
 0x185   :  { %v230_v44 = vadd.f32 %v350_v41, %v220_v42 }
 0x187   :  { %v231_v45 = vmax.f32 %v230_v44, 0.0 }
 0x189   :  { %423 = vmatmul.mubr.f32.vlgmr.msra.gmra.mrb[0].mxu0 %v231_v45 }
 0x25c   :  { %v321_v47 = vpop.f32.mrb[0].mxu0 }
 0x25d   :  { %v322_v48 = vadd.f32 %v351_v46, %v321_v47  ;;  %v424_v49 = vpop.f32.mrb[1].mxu0 }
 0x25f   :  { %v325_v51 = vmax.f32 %v322_v48, 0.0 }
 0x261   :  { %v333_v52 = vmul.f32 %v352_v50, %v325_v51 }
 0x263   :  { %334 = vadd.xlane.f32.xlu0 %v333_v52 }
 0x2f0   :  { %v335_v54 = vpop.xlane.xlu0 %334 }
 0x2f1   :  { %v338_v55 = vadd.f32 %v337_v53, %v335_v54 }
 0x2f3   :  { %340 = vst.msk [vmem:[%s627_s9] sm:$0xff] %vm339_vm4, %v338_v55 }
 0x2f4   :  { %345 = vsyncpa [#allocation4], 1 }
 0x2f5   :  { %346 = vsyncpa [#allocation6], 1 }

</bundles_post_ra>
